<compile_context>
chip_gen: v7x
topology: tpu7x:2x2x1
jax: 0.10.0
libtpu: 0.0.40
codegen_flags: <defaults>
</compile_context>

<pallas_src>
import jax
import jax.numpy as jnp
from jax.experimental import pallas as pl
from jax.experimental.pallas import tpu as pltpu


def make_fine_tune_kernel(*, B, C, D, inv_s):
    """Builds the fused kernel for static (B, C, D) and 1/S."""

    def kernel(block_ref, w_enc_ref, b_enc_ref, w_head_ref, b_head_ref,
               out_ref, acc_ref):
        s = pl.program_id(0)

        @pl.when(s == 0)
        def _init():
            acc_ref[...] = jnp.zeros_like(acc_ref)

        # --- streamed pooling reduce over this S tile -----------------------
        # block_ref: (C*B, S_TILE) bf16 in VMEM; accumulate in f32.
        x = block_ref[...].astype(jnp.float32)
        acc_ref[...] += jnp.sum(x, axis=-1, keepdims=True)        # (C*B, 1)

        # --- finalize: projection + ReLU + (eval) dropout + head ------------
        @pl.when(s == pl.num_programs(0) - 1)
        def _finalize():
            pooled = acc_ref[...] * inv_s                          # (C*B, 1)

            # encoder linear as an unrolled VPU broadcast-FMA (K = C is tiny;
            # a real MXU matmul here would be a degenerate shape).
            h = jnp.zeros((B, D), dtype=jnp.float32)
            for c in range(C):
                # rows [c*B, (c+1)*B) of `pooled` are channel c (channel-major
                # flattening done in the wrapper).
                h = h + pooled[c * B:(c + 1) * B, :] * w_enc_ref[c:c + 1, :]
            h = jnp.maximum(h + b_enc_ref[...], 0.0)               # bias + ReLU

            # linear_pred: Dropout(p=0.2) == identity in eval mode.
            logits = jnp.dot(h, w_head_ref[...],
                             preferred_element_type=jnp.float32)   # (B, N_pad)
            out_ref[...] = (logits + b_head_ref[...]).astype(out_ref.dtype)

    return kernel


def fine_tune_forward(block, w_enc, b_enc, w_head, b_head, *, s_tile=512):
    """block: (B, C, T, H, W) float32.  Returns logits (B, class_num)."""
    B, C, T, H, W = block.shape
    S = T * H * W
    D = w_enc.shape[1]
    N = w_head.shape[1]
    N_pad = ((N + 127) // 128) * 128

    # Channel-major flatten to (C*B, S): full 8-sublane tiles for the reduce,
    # and each channel occupies a contiguous group of B rows.
    x = jnp.transpose(block, (1, 0, 2, 3, 4)).reshape(C * B, S)
    x = x.astype(jnp.bfloat16)  # halve HBM traffic; f32 accumulation in-kernel

    # Pad the reduction axis up to a multiple of the tile (zeros don't change
    # the sum; the mean divides by the true S).
    n_tiles = pl.cdiv(S, s_tile)
    S_pad = n_tiles * s_tile
    if S_pad != S:
        x = jnp.pad(x, ((0, 0), (0, S_pad - S)))

    # Pad the head to a lane-dense 128-column output.
    if N_pad != N:
        w_head_p = jnp.pad(w_head, ((0, 0), (0, N_pad - N)))
        b_head_p = jnp.pad(b_head, (0, N_pad - N))
    else:
        w_head_p, b_head_p = w_head, b_head

    b_enc2 = b_enc.reshape(1, D)
    b_head2 = b_head_p.reshape(1, N_pad)

    kernel = make_fine_tune_kernel(B=B, C=C, D=D, inv_s=1.0 / float(S))

    out_padded = pl.pallas_call(
        kernel,
        out_shape=jax.ShapeDtypeStruct((B, N_pad), jnp.float32),
        grid=(n_tiles,),
        in_specs=[
            pl.BlockSpec((C * B, s_tile), lambda s: (0, s)),   # streamed tiles
            pl.BlockSpec((C, D), lambda s: (0, 0)),            # w_enc (resident)
            pl.BlockSpec((1, D), lambda s: (0, 0)),            # b_enc
            pl.BlockSpec((D, N_pad), lambda s: (0, 0)),        # w_head (padded)
            pl.BlockSpec((1, N_pad), lambda s: (0, 0)),        # b_head (padded)
        ],
        out_specs=pl.BlockSpec((B, N_pad), lambda s: (0, 0)),
        scratch_shapes=[pltpu.VMEM((C * B, 1), jnp.float32)],  # pooled-sum acc
        compiler_params=pltpu.CompilerParams(
            dimension_semantics=("arbitrary",)),               # reduction axis
    )(x, w_enc, b_enc2, w_head_p, b_head2)

    return out_padded[:, :N]


def reference_forward(block, w_enc, b_enc, w_head, b_head):
    """Pure-JAX reference with identical (bf16-input) semantics."""
    B, C = block.shape[:2]
    xb = block.astype(jnp.bfloat16).astype(jnp.float32)
    pooled = jnp.mean(xb.reshape(B, C, -1), axis=-1)
    h = jnp.maximum(pooled @ w_enc + b_enc, 0.0)
    return h @ w_head + b_head


if __name__ == "__main__":
    # Small shapes consistent with a 3D video block + Linear(512 -> 101) head.
    B, C, T, H, W = 2, 4, 8, 16, 16
    input_dim, class_num = 512, 101

    key = jax.random.PRNGKey(0)
    k_block, k_we, k_be, k_wh, k_bh = jax.random.split(key, 5)

    block = jax.random.normal(k_block, (B, C, T, H, W), dtype=jnp.float32)

    # Deterministic synthetic parameters (not loaded from a checkpoint).
    w_enc = jax.random.normal(k_we, (C, input_dim), dtype=jnp.float32) * 0.05
    b_enc = jax.random.normal(k_be, (input_dim,), dtype=jnp.float32) * 0.01
    w_head = jax.random.normal(k_wh, (input_dim, class_num),
                               dtype=jnp.float32) * 0.05
    b_head = jax.random.normal(k_bh, (class_num,), dtype=jnp.float32) * 0.01

    out = fine_tune_forward(block, w_enc, b_enc, w_head, b_head)
    out = jax.block_until_ready(out)

    ref = reference_forward(block, w_enc, b_enc, w_head, b_head)
    assert out.shape == (B, class_num)
    assert jnp.allclose(out, ref, atol=1e-3, rtol=1e-3), "mismatch vs reference"

    print("KERNEL_OK")
</pallas_src>

<mosaic_0001>
module attributes {stable_mosaic.version = 11 : i64} {
  func.func @kernel(%arg0: i32, %arg1: memref<8x512xbf16, #tpu.memory_space<vmem>>, %arg2: memref<4x512xf32, #tpu.memory_space<vmem>>, %arg3: memref<1x512xf32, #tpu.memory_space<vmem>>, %arg4: memref<512x128xf32, #tpu.memory_space<vmem>>, %arg5: memref<1x128xf32, #tpu.memory_space<vmem>>, %arg6: memref<2x128xf32, #tpu.memory_space<vmem>>, %arg7: memref<8x1xf32, #tpu.memory_space<vmem>>) attributes {dimension_semantics = [#tpu.dimension_semantics<arbitrary>], iteration_bounds = array<i64: 4>, scalar_prefetch = 0 : i64, scratch_operands = 1 : i64, tpu.core_type = #tpu.core_type<tc>, window_params = [{transform_indices = @transform_0, window_bounds = array<i64: 8, 512>}, {pipeline_mode = #tpu.pipeline_mode<synchronous>, transform_indices = @transform_1, window_bounds = array<i64: 4, 512>}, {pipeline_mode = #tpu.pipeline_mode<synchronous>, transform_indices = @transform_2, window_bounds = array<i64: 1, 512>}, {pipeline_mode = #tpu.pipeline_mode<synchronous>, transform_indices = @transform_3, window_bounds = array<i64: 512, 128>}, {pipeline_mode = #tpu.pipeline_mode<synchronous>, transform_indices = @transform_4, window_bounds = array<i64: 1, 128>}, {pipeline_mode = #tpu.pipeline_mode<synchronous>, transform_indices = @transform_5, window_bounds = array<i64: 2, 128>}]} {
    %c0_i32 = arith.constant 0 : i32
    %0 = arith.cmpi eq, %arg0, %c0_i32 : i32
    %1 = arith.extui %0 : i1 to i32
    %c0_i32_0 = arith.constant 0 : i32
    %2 = arith.cmpi ne, %1, %c0_i32_0 : i32
    scf.if %2 {
      %cst_7 = arith.constant 0.000000e+00 : f32
      %13 = vector.broadcast %cst_7 : f32 to vector<8x1xf32>
      %c0_8 = arith.constant 0 : index
      %c0_9 = arith.constant 0 : index
      %14 = vector.load %arg7[%c0_8, %c0_9] : memref<8x1xf32, #tpu.memory_space<vmem>>, vector<8x1xf32>
      tpu.vector_store %arg7[%c0_8, %c0_9], %13 {strides = array<i32>} : memref<8x1xf32, #tpu.memory_space<vmem>>, vector<8x1xf32>,
    } else {
    }
    %c0 = arith.constant 0 : index
    %c0_1 = arith.constant 0 : index
    %3 = vector.load %arg1[%c0, %c0_1] : memref<8x512xbf16, #tpu.memory_space<vmem>>, vector<8x512xbf16>
    %4 = arith.extf %3 : vector<8x512xbf16> to vector<8x512xf32>
    %c0_2 = arith.constant 0 : index
    %c0_3 = arith.constant 0 : index
    %5 = vector.load %arg7[%c0_2, %c0_3] : memref<8x1xf32, #tpu.memory_space<vmem>>, vector<8x1xf32>
    %cst = arith.constant dense<0.000000e+00> : vector<8xf32>
    %6 = vector.multi_reduction <add>, %4, %cst [1] : vector<8x512xf32> to vector<8xf32>
    %7 = vector.shape_cast %6 : vector<8xf32> to vector<8x1xf32>
    %8 = arith.addf %5, %7 : vector<8x1xf32>
    %c0_4 = arith.constant 0 : index
    %c0_5 = arith.constant 0 : index
    %9 = vector.load %arg7[%c0_4, %c0_5] : memref<8x1xf32, #tpu.memory_space<vmem>>, vector<8x1xf32>
    tpu.vector_store %arg7[%c0_4, %c0_5], %8 {strides = array<i32>} : memref<8x1xf32, #tpu.memory_space<vmem>>, vector<8x1xf32>,
    %c3_i32 = arith.constant 3 : i32
    %10 = arith.cmpi eq, %arg0, %c3_i32 : i32
    %11 = arith.extui %10 : i1 to i32
    %c0_i32_6 = arith.constant 0 : i32
    %12 = arith.cmpi ne, %11, %c0_i32_6 : i32
    scf.if %12 {
      %c0_7 = arith.constant 0 : index
      %c0_8 = arith.constant 0 : index
      %13 = vector.load %arg7[%c0_7, %c0_8] : memref<8x1xf32, #tpu.memory_space<vmem>>, vector<8x1xf32>
      %cst_9 = arith.constant 4.8828125E-4 : f32
      %14 = vector.broadcast %cst_9 : f32 to vector<8x1xf32>
      %15 = arith.mulf %13, %14 : vector<8x1xf32>
      %cst_10 = arith.constant 0.000000e+00 : f32
      %16 = vector.broadcast %cst_10 : f32 to vector<2x512xf32>
      %17 = vector.extract_strided_slice %15 {offsets = [0, 0], sizes = [2, 1], strides = [1, 1]} : vector<8x1xf32> to vector<2x1xf32>
      %c0_11 = arith.constant 0 : index
      %c0_12 = arith.constant 0 : index
      %18 = vector.load %arg2[%c0_11, %c0_12] : memref<4x512xf32, #tpu.memory_space<vmem>>, vector<1x512xf32>
      %19 = vector.broadcast %17 : vector<2x1xf32> to vector<2x512xf32>
      %20 = vector.broadcast %18 : vector<1x512xf32> to vector<2x512xf32>
      %21 = arith.mulf %19, %20 : vector<2x512xf32>
      %22 = arith.addf %16, %21 : vector<2x512xf32>
      %23 = vector.extract_strided_slice %15 {offsets = [2, 0], sizes = [2, 1], strides = [1, 1]} : vector<8x1xf32> to vector<2x1xf32>
      %c1 = arith.constant 1 : index
      %c0_13 = arith.constant 0 : index
      %24 = vector.load %arg2[%c1, %c0_13] : memref<4x512xf32, #tpu.memory_space<vmem>>, vector<1x512xf32>
      %25 = vector.broadcast %23 : vector<2x1xf32> to vector<2x512xf32>
      %26 = vector.broadcast %24 : vector<1x512xf32> to vector<2x512xf32>
      %27 = arith.mulf %25, %26 : vector<2x512xf32>
      %28 = arith.addf %22, %27 : vector<2x512xf32>
      %29 = vector.extract_strided_slice %15 {offsets = [4, 0], sizes = [2, 1], strides = [1, 1]} : vector<8x1xf32> to vector<2x1xf32>
      %c2 = arith.constant 2 : index
      %c0_14 = arith.constant 0 : index
      %30 = vector.load %arg2[%c2, %c0_14] : memref<4x512xf32, #tpu.memory_space<vmem>>, vector<1x512xf32>
      %31 = vector.broadcast %29 : vector<2x1xf32> to vector<2x512xf32>
      %32 = vector.broadcast %30 : vector<1x512xf32> to vector<2x512xf32>
      %33 = arith.mulf %31, %32 : vector<2x512xf32>
      %34 = arith.addf %28, %33 : vector<2x512xf32>
      %35 = vector.extract_strided_slice %15 {offsets = [6, 0], sizes = [2, 1], strides = [1, 1]} : vector<8x1xf32> to vector<2x1xf32>
      %c3 = arith.constant 3 : index
      %c0_15 = arith.constant 0 : index
      %36 = vector.load %arg2[%c3, %c0_15] : memref<4x512xf32, #tpu.memory_space<vmem>>, vector<1x512xf32>
      %37 = vector.broadcast %35 : vector<2x1xf32> to vector<2x512xf32>
      %38 = vector.broadcast %36 : vector<1x512xf32> to vector<2x512xf32>
      %39 = arith.mulf %37, %38 : vector<2x512xf32>
      %40 = arith.addf %34, %39 : vector<2x512xf32>
      %c0_16 = arith.constant 0 : index
      %c0_17 = arith.constant 0 : index
      %41 = vector.load %arg3[%c0_16, %c0_17] : memref<1x512xf32, #tpu.memory_space<vmem>>, vector<1x512xf32>
      %42 = vector.broadcast %41 : vector<1x512xf32> to vector<2x512xf32>
      %43 = arith.addf %40, %42 : vector<2x512xf32>
      %cst_18 = arith.constant 0.000000e+00 : f32
      %44 = vector.broadcast %cst_18 : f32 to vector<2x512xf32>
      %45 = arith.maximumf %43, %44 : vector<2x512xf32>
      %c0_19 = arith.constant 0 : index
      %c0_20 = arith.constant 0 : index
      %46 = vector.load %arg4[%c0_19, %c0_20] : memref<512x128xf32, #tpu.memory_space<vmem>>, vector<512x128xf32>
      %cst_21 = arith.constant dense<0.000000e+00> : vector<2x128xf32>
      %47 = tpu.matmul %45, %46, %cst_21 {dimension_numbers = #tpu.dot_dimension_numbers<[1], [0], [0], [1], [0, 0, 1, 1], [], []>} : vector<2x512xf32>, vector<512x128xf32>, vector<2x128xf32> -> vector<2x128xf32>
      %c0_22 = arith.constant 0 : index
      %c0_23 = arith.constant 0 : index
      %48 = vector.load %arg5[%c0_22, %c0_23] : memref<1x128xf32, #tpu.memory_space<vmem>>, vector<1x128xf32>
      %49 = vector.broadcast %48 : vector<1x128xf32> to vector<2x128xf32>
      %50 = arith.addf %47, %49 : vector<2x128xf32>
      %c0_24 = arith.constant 0 : index
      %c0_25 = arith.constant 0 : index
      %51 = vector.load %arg6[%c0_24, %c0_25] : memref<2x128xf32, #tpu.memory_space<vmem>>, vector<2x128xf32>
      tpu.vector_store %arg6[%c0_24, %c0_25], %50 {strides = array<i32>} : memref<2x128xf32, #tpu.memory_space<vmem>>, vector<2x128xf32>,
    } else {
    }
    return
  }
  func.func @transform_0(%arg0: i32) -> (i32, i32) {
    %c0_i32 = arith.constant 0 : i32
    %c0_i32_0 = arith.constant 0 : i32
    return %c0_i32, %arg0 : i32, i32
  }
  func.func @transform_1(%arg0: i32) -> (i32, i32) {
    %c0_i32 = arith.constant 0 : i32
    %c0_i32_0 = arith.constant 0 : i32
    %c0_i32_1 = arith.constant 0 : i32
    return %c0_i32, %c0_i32_0 : i32, i32
  }
  func.func @transform_2(%arg0: i32) -> (i32, i32) {
    %c0_i32 = arith.constant 0 : i32
    %c0_i32_0 = arith.constant 0 : i32
    %c0_i32_1 = arith.constant 0 : i32
    return %c0_i32, %c0_i32_0 : i32, i32
  }
  func.func @transform_3(%arg0: i32) -> (i32, i32) {
    %c0_i32 = arith.constant 0 : i32
    %c0_i32_0 = arith.constant 0 : i32
    %c0_i32_1 = arith.constant 0 : i32
    return %c0_i32, %c0_i32_0 : i32, i32
  }
  func.func @transform_4(%arg0: i32) -> (i32, i32) {
    %c0_i32 = arith.constant 0 : i32
    %c0_i32_0 = arith.constant 0 : i32
    %c0_i32_1 = arith.constant 0 : i32
    return %c0_i32, %c0_i32_0 : i32, i32
  }
  func.func @transform_5(%arg0: i32) -> (i32, i32) {
    %c0_i32 = arith.constant 0 : i32
    %c0_i32_0 = arith.constant 0 : i32
    %c0_i32_1 = arith.constant 0 : i32
    return %c0_i32, %c0_i32_0 : i32, i32
  }
}

</mosaic_0001>

<bundles_post_ra>
// kernel: tpu_custom_call.1
= control target key start
LH: loop header
LB: loop body
LE: loop exit
PB: predicated region body
PF: predicated region fallthrough
CT: control target
= control target key end

     0   :  { %10 = vsyncpa [#allocation4], 0  ;;  %s1420_s0 = inlined_call_operand.hbm [shape: bf16[8,2048], index: 0, kind: input, shape index: {}]   ;;  %s1421_s1 = inlined_call_operand.hbm [shape: f32[4,512], index: 1, kind: input, shape index: {}]   ;;  %s1422_s2 = inlined_call_operand.vmem [shape: f32[1,512], index: 2, kind: input, shape index: {}]   ;;  %s1423_s3 = inlined_call_operand.hbm [shape: f32[512,128], index: 3, kind: input, shape index: {}]   ;;  %s1424_s4 = inlined_call_operand.vmem [shape: f32[1,128], index: 4, kind: input, shape index: {}]   ;;  %s1425_s5 = inlined_call_operand.hbm [shape: f32[2,128], index: 5, kind: output, shape index: {}]  }
   0x1   :  { %12 = vsyncpa [#allocation4 + $0x1], 0 }
   0x2   :  { %13 = vsyncpa [#allocation7], 0 }
   0x3   :  { %14 = vsyncpa [#allocation5], 0  ;;  %s1186_s18 = smov 0   ;;  %s1188_s19 = smov 0  }
   0x4   :  { %s1190_s20 = smov 0   ;;  %s1192_s21 = smov 0  }
   0x5 LB: > { %s1205_s22 = sadd.s32 4294967295, %s1146_s21   ;;  %p40_p0 = scmp.ne.s32.totalorder %s1138_s19, %s1134_s18  ;;  %s1146_s21 = sphi %s1192_s21, %s1441_s21   ;;  %s1142_s20 = sphi %s1190_s20, %s1440_s20   ;;  %s1138_s19 = sphi %s1188_s19, %s1439_s19   ;;  %s1134_s18 = sphi %s1186_s18, %s1438_s18  }
   0x6   : > { %p1426_p1 = scmp.eq.s32.totalorder %s1205_s22, 0  ;;  %p767_p2 = scmp.ge.s32.totalorder %s1146_s21, 1 }
   0x7   : > { %p156_p3 = scmp.lt.s32.totalorder %s1146_s21, 5  ;;  %s1148_s25 = smov [#allocation6]  }
   0x8   : > { %p1214_p5 = por %p1426_p1, %p40_p0  ;;  %s169_s26 = sshll.u32 %s1148_s25, 4  ;;  %s170_s26 = int_to_ptr.vmem [resolvable:$true] %s169_s26 }
   0x9   : > { %p1218_p6 = pnand %p767_p2, %p156_p3  ;;  %s1149_s27 = smov [#allocation8]  }
   0xa   : > { %s1429_s23 = scalar_select %p1214_p5, 1, 0 }
   0xb   : > { %s1430_s24 = scalar_select %p1218_p6, 1, 0 }
   0xc   : > { %p934_p7 = pneg %p1218_p6  ;;  %s182_s28 = sshll.u32 %s1149_s27, 4  ;;  %s1230_s28 = int_to_ptr.vmem [resolvable:$true] %s182_s28 }
   0xd   : > { %s992_s7 = scalar_lea.hbm %s1421_s1, 256 }
   0xe   : > { %p1226_p8 = pnand %p934_p7, %p1426_p1  ;;  %p993_p9 = scmp.ne.s32.totalorder %s1421_s1, %s992_s7 }
   0xf   : > { %p999_p13 = scmp.lt.u32.totalorder %s992_s7, %s1421_s1 }
  0x10   : > { %p994_p10 = pneg %p1226_p8 }
  0x12   : > { %p995_p11 = pnand %p994_p10, %p993_p9 }
  0x14   : > { %p996_p12 = pneg %p995_p11 }
  0x16   : > { %p1001_p0 = pnand %p999_p13, %p996_p12 }
  0x18   : > { %1004 = shalt.err (!%p1001_p0)
}
  0x19   : > { %s1005_s12 = scalar_lea.vmem %s170_s26, 256  ;;  %p1013_p4 = scmp.lt.s32.totalorder %s170_s26, %s170_s26 }
  0x1a   : > { %p1006_p2 = scmp.ne.s32.totalorder %s170_s26, %s1005_s12  ;;  %p1014_p1 = scmp.lt.s32.totalorder %s1005_s12, %s1005_s12 }
  0x1c   : > { %p1008_p3 = pnand %p1006_p2, %p994_p10  ;;  %p1015_p5 = por %p1014_p1, %p1013_p4 }
  0x1e   : > { %p1009_p7 = pneg %p1008_p3 }
  0x20   : > { %p1016_p6 = pnand %p1015_p5, %p1009_p7 }
  0x22   : > { %1019 = shalt.err (!%p1016_p6)
}
  0x23   : > { %937 = dma.hbm_to_vmem [thread:$0]  (!%p1226_p8), %s1421_s1, 256, %s170_s26, [#allocation7]  }
  0x24   : > { %s1020_s17 = scalar_lea.hbm %s1423_s3, 8192 }
  0x25   : > { %p1021_p9 = scmp.ne.s32.totalorder %s1423_s3, %s1020_s17  ;;  %p1027_p5 = scmp.lt.u32.totalorder %s1020_s17, %s1423_s3 }
  0x27   : > { %p1023_p1 = pnand %p1021_p9, %p994_p10 }
  0x29   : > { %p1024_p4 = pneg %p1023_p1 }
  0x2b   : > { %p1029_p6 = pnand %p1027_p5, %p1024_p4 }
  0x2d   : > { %1032 = shalt.err (!%p1029_p6)
}
  0x2e   : > { %s1033_s26 = scalar_lea.vmem %s1230_s28, 8192  ;;  %p1041_p0 = scmp.lt.s32.totalorder %s1230_s28, %s1230_s28 }
  0x2f   : > { %p1034_p11 = scmp.ne.s32.totalorder %s1230_s28, %s1033_s26  ;;  %p1042_p2 = scmp.lt.s32.totalorder %s1033_s26, %s1033_s26 }
  0x31   : > { %p1036_p12 = pnand %p1034_p11, %p994_p10  ;;  %p1043_p3 = por %p1042_p2, %p1041_p0 }
  0x33   : > { %p1037_p13 = pneg %p1036_p12 }
  0x35   : > { %p1044_p7 = pnand %p1043_p3, %p1037_p13 }
  0x37   : > { %1047 = shalt.err (!%p1044_p7)
}
  0x38   : > { %s1150_s6 = smov 128   ;;  %s1151_s7 = smov 8  }
  0x39   : > { %940 = dma.hbm_to_vmem [thread:$0]  (!%p1226_p8), %s1423_s3, 8192, %s1230_s28, [#allocation7], %s1150_s6, %s1150_s6, %s1151_s7  }
  0x3a   : > { %s1280_s10 = sadd.s32 1, %s1146_s21   ;;  %s27_s11 = sadd.s32 1, %s1142_s20 }
  0x3b   : > { %s24_s12 = ssub.s32 %s1146_s21, %s1280_s10  ;;  %p34_p10 = scmp.ne.s32.totalorder %s1142_s20, %s1138_s19 }
  0x3c   : > { %p25_p9 = scmp.eq.s32.totalorder %s24_s12, 0  ;;  %p35_p1 = scmp.eq.s32.totalorder %s1146_s21, 0 }
  0x3d   : > { %p947_p4 = scmp.lt.s32.totalorder %s1146_s21, 4  ;;  %s199_s13 = sand.u32 1, %s1142_s20  }
  0x3e   : > { %s1291_s14 = scalar_select %p25_p9, %s1142_s20, %s27_s11  }
  0x3f   : > { %p36_p5 = por %p35_p1, %p34_p10  ;;  %s771_s15 = sshll.u32 %s199_s13, 4 }
  0x40   : > { %s785_s16 = sshll.u32 %s1146_s21, 8  ;;  %s203_s28 = scalar_lea.vmem [#allocation3], %s771_s15 }
  0x41   : > { %s1297_s18 = scalar_lea.hbm %s1420_s0, %s785_s16  ;;  %s211_s25 = sshll.u32 %s203_s28, 4  ;;  %s1303_s25 = int_to_ptr.vmem [resolvable:$true] %s211_s25 }
  0x42   : > { %p1299_p8 = pnand %p947_p4, %p36_p5  ;;  %s200_s21 = scalar_lea.sflag [#allocation4], %s199_s13 }
  0x43   : > { %s1048_s30 = scalar_lea.hbm %s1297_s18, 256  ;;  %s1053_s7 = scalar_lea.hbm %s1420_s0, 1024 }
  0x44   : > { %p1049_p6 = scmp.ne.s32.totalorder %s1297_s18, %s1048_s30  ;;  %p1050_p11 = pneg %p1299_p8 }
  0x45   : > { %p1054_p0 = scmp.lt.u32.totalorder %s1297_s18, %s1420_s0  ;;  %p1055_p2 = scmp.lt.u32.totalorder %s1053_s7, %s1048_s30 }
  0x46   : > { %p1051_p12 = pnand %p1050_p11, %p1049_p6  ;;  %p1057_p7 = scmp.lt.u32.totalorder %s1048_s30, %s1297_s18 }
  0x47   : > { %p1056_p3 = por %p1055_p2, %p1054_p0 }
  0x48   : > { %p1052_p13 = pneg %p1051_p12 }
  0x49   : > { %p1058_p10 = por %p1057_p7, %p1056_p3 }
  0x4b   : > { %p1059_p9 = pnand %p1058_p10, %p1052_p13 }
  0x4d   : > { %1062 = shalt.err (!%p1059_p9)
}
  0x4e   : > { %s1063_s11 = scalar_lea.vmem %s1303_s25, 256  ;;  %s1152_s12 = smov [#allocation3]  }
  0x4f   : > { %p1064_p1 = scmp.ne.s32.totalorder %s1303_s25, %s1063_s11  ;;  %s1068_s13 = sshll.u32 %s1152_s12, 4  ;;  %s1069_s13 = int_to_ptr.vmem [resolvable:$false] %s1068_s13 }
  0x50   : > { %s1070_s15 = scalar_lea.vmem %s1069_s13, 512  ;;  %p1071_p6 = scmp.lt.s32.totalorder %s1303_s25, %s1069_s13 }
  0x51   : > { %p1066_p4 = pnand %p1064_p1, %p1050_p11  ;;  %p1072_p12 = scmp.lt.s32.totalorder %s1070_s15, %s1063_s11 }
  0x53   : > { %p1067_p5 = pneg %p1066_p4  ;;  %p1073_p0 = por %p1072_p12, %p1071_p6 }
  0x55   : > { %p1074_p2 = pnand %p1073_p0, %p1067_p5 }
  0x57   : > { %1077 = shalt.err (!%p1074_p2)
}
  0x58   : > { %944 = dma.hbm_to_vmem [thread:$0]  (!%p1299_p8), %s1297_s18, 256, %s1303_s25, %s200_s21  }
  0x59   : > { %p1433_p13 = scmp.ne.s32.totalorder %s1430_s24, 0 }
  0x5a   : > { %s222_s16 = sand.u32 (!%p1433_p13), 1, %s1138_s19   ;;  %p1434_p11 = scmp.ne.s32.totalorder (!%p1433_p13), %s1429_s23, 0 }
  0x5b   : > { %220 = sbr.rel (%p1433_p13) target bundleno = 664 (0x298), region = 40  ;;  %s775_s29 = sshll.u32 (!%p1433_p13), %s222_s16, 4 }
  0x5c   : > { %s223_s17 = scalar_lea.sflag (!%p1433_p13), [#allocation4], %s222_s16  ;;  %s226_s28 = scalar_lea.vmem (!%p1433_p13), [#allocation3], %s775_s29 }
  0x62   : > { %1121 = dma.done.wait (%p1434_p11), %s223_s17, 256  }
  0x63   : > { %1123 = vsyncadd (%p1434_p11), %s223_s17, 4294967040  ;;  %p1435_p3 = scmp.eq.s32.totalorder %s1205_s22, 0 }
  0x65   : > { %1125 = dma.done.wait (%p1435_p3), [#allocation7], 8448   ;;  %p1436_p7 = pmov %p1435_p3 }
  0x66   : > { %p1437_p8 = scmp.ne.s32.totalorder %s1205_s22, 0 }
  0x67   : > { %1127 = vsyncadd (%p1436_p7), [#allocation7], 4294958848  ;;  %vm261_vm0 = vcmask (!%p1437_p8), 7168   ;;  %v1153_v0 = vmov (!%p1437_p8), 0.0  }
  0x68   : > { %260 = sbr.rel (%p1437_p8) target bundleno = 111 (0x6f), region = 56  ;;  %262 = vst.msk [vmem:[#allocation2] sm:$0xff] (!%p1437_p8), %vm261_vm0, %v1153_v0 }
  0x6f PF: > { %v263_v1 = vld [vmem:[%s226_s28] sm:$0xff]  ;;  %v264_v2 = vld [vmem:[%s226_s28 + $0x8] sm:$0xff]  ;;  %vm276_vm1 = vcmask 7168   ;;  %p779_p10 = scmp.ne.s32.totalorder %s1205_s22, 3 }
  0x70   : > { %v265_v3 = vunpack.c.l.bf16 %v263_v1  ;;  %v266_v4 = vunpack.c.h.bf16 %v263_v1  ;;  %v267_v5 = vunpack.c.l.bf16 %v264_v2  ;;  %v268_v6 = vunpack.c.h.bf16 %v264_v2  ;;  %v269_v10 = vld [vmem:[#allocation2] sm:$0xff]  ;;  %v494_v14 = vld [vmem:[#allocation8 + $0x80] sm:$0xff] (!%p779_p10)  ;;  %v496_v28 = vld [vmem:[#allocation8 + $0x90] sm:$0xff] (!%p779_p10) }
  0x71   : > { %v495_v15 = vld [vmem:[#allocation8 + $0x88] sm:$0xff] (!%p779_p10)  ;;  %v1154_v16 = vmov (!%p779_p10), 0   ;;  %v526_v19 = vld [vmem:[#allocation8 + $0x180] sm:$0xff] (!%p779_p10)  ;;  %v497_v29 = vld [vmem:[#allocation8 + $0x98] sm:$0xff] (!%p779_p10) }
  0x72   : > { %v270_v7 = vadd.f32 %v266_v4, %v265_v3  ;;  %991 = vset.pattern.permute.xlu0 (!%p779_p10), %v1154_v16  ;;  %v856_v18 = vpack.c.bf16 (!%p779_p10), %v495_v15, %v494_v14  ;;  %v527_v20 = vld [vmem:[#allocation8 + $0x188] sm:$0xff] (!%p779_p10)  ;;  %v478_v21 = vld [vmem:[#allocation8] sm:$0xff] (!%p779_p10)  ;;  %v528_v30 = vld [vmem:[#allocation8 + $0x190] sm:$0xff] (!%p779_p10)  ;;  %v860_v31 = vpack.c.bf16 (!%p779_p10), %v497_v29, %v496_v28 }
  0x73   : > { %v888_v22 = vpack.c.bf16 (!%p779_p10), %v527_v20, %v526_v19  ;;  %v479_v23 = vld [vmem:[#allocation8 + $0x8] sm:$0xff] (!%p779_p10)  ;;  %v510_v24 = vld [vmem:[#allocation8 + $0x100] sm:$0xff] (!%p779_p10)  ;;  %v529_v32 = vld [vmem:[#allocation8 + $0x198] sm:$0xff] (!%p779_p10) }
  0x74   : > { %v271_v8 = vadd.f32 %v270_v7, %v267_v5  ;;  %v511_v25 = vld [vmem:[#allocation8 + $0x108] sm:$0xff] (!%p779_p10)  ;;  %857 = vmatprep.subr.bf16.mxu0 (!%p779_p10), %v856_v18  ;;  %v858_v26 = vpack.c.bf16 (!%p779_p10), %v479_v23, %v478_v21  ;;  %v480_v33 = vld [vmem:[#allocation8 + $0x10] sm:$0xff] (!%p779_p10)  ;;  %v481_v34 = vld [vmem:[#allocation8 + $0x18] sm:$0xff] (!%p779_p10)  ;;  %v892_v35 = vpack.c.bf16 (!%p779_p10), %v529_v32, %v528_v30 }
  0x75   : > { %v890_v27 = vpack.c.bf16 (!%p779_p10), %v511_v25, %v510_v24  ;;  %889 = vmatprep.subr.bf16.mxu1 (!%p779_p10), %v888_v22  ;;  %v862_v36 = vpack.c.bf16 (!%p779_p10), %v481_v34, %v480_v33  ;;  %v512_v37 = vld [vmem:[#allocation8 + $0x110] sm:$0xff] (!%p779_p10)  ;;  %v513_v38 = vld [vmem:[#allocation8 + $0x118] sm:$0xff] (!%p779_p10)  ;;  %v498_v39 = vld [vmem:[#allocation8 + $0xa0] sm:$0xff] (!%p779_p10) }
  0x76   : > { %v272_v9 = vadd.f32 %v271_v8, %v268_v6  ;;  %859 = vmatpush3.bf16.msra.mxu0 (!%p779_p10), %v858_v26  ;;  %v894_v40 = vpack.c.bf16 (!%p779_p10), %v513_v38, %v512_v37  ;;  %v499_v41 = vld [vmem:[#allocation8 + $0xa8] sm:$0xff] (!%p779_p10)  ;;  %v530_v42 = vld [vmem:[#allocation8 + $0x1a0] sm:$0xff] (!%p779_p10)  ;;  %v500_v50 = vld [vmem:[#allocation8 + $0xb0] sm:$0xff] (!%p779_p10) }
  0x77   : > { %891 = vmatpush3.bf16.msra.mxu1 (!%p779_p10), %v890_v27  ;;  %861 = vmatprep.subr.bf16.mxu0 (!%p779_p10), %v860_v31  ;;  %v531_v43 = vld [vmem:[#allocation8 + $0x1a8] sm:$0xff] (!%p779_p10)  ;;  %v864_v44 = vpack.c.bf16 (!%p779_p10), %v499_v41, %v498_v39  ;;  %v482_v46 = vld [vmem:[#allocation8 + $0x20] sm:$0xff] (!%p779_p10)  ;;  %v501_v51 = vld [vmem:[#allocation8 + $0xb8] sm:$0xff] (!%p779_p10) }
  0x78   : > { %273 = vadd.xlane.f32.xlu0 %v272_v9  ;;  %893 = vmatprep.subr.bf16.mxu1 (!%p779_p10), %v892_v35  ;;  %v896_v45 = vpack.c.bf16 (!%p779_p10), %v531_v43, %v530_v42  ;;  %v483_v47 = vld [vmem:[#allocation8 + $0x28] sm:$0xff] (!%p779_p10)  ;;  %v514_v48 = vld [vmem:[#allocation8 + $0x120] sm:$0xff] (!%p779_p10)  ;;  %v532_v54 = vld [vmem:[#allocation8 + $0x1b0] sm:$0xff] (!%p779_p10)  ;;  %v868_v57 = vpack.c.bf16 (!%p779_p10), %v501_v51, %v500_v50 }
  0x79   : > { %v515_v49 = vld [vmem:[#allocation8 + $0x128] sm:$0xff] (!%p779_p10)  ;;  %v866_v52 = vpack.c.bf16 (!%p779_p10), %v483_v47, %v482_v46  ;;  %v533_v55 = vld [vmem:[#allocation8 + $0x1b8] sm:$0xff] (!%p779_p10)  ;;  %v484_v56 = vld [vmem:[#allocation8 + $0x30] sm:$0xff] (!%p779_p10) }
  0x7a   : > { %863 = vmatpush3.bf16.msra.mxu0 (!%p779_p10), %v862_v36  ;;  %v898_v53 = vpack.c.bf16 (!%p779_p10), %v515_v49, %v514_v48  ;;  %v900_v58 = vpack.c.bf16 (!%p779_p10), %v533_v55, %v532_v54  ;;  %v485_v59 = vld [vmem:[#allocation8 + $0x38] sm:$0xff] (!%p779_p10)  ;;  %v516_v60 = vld [vmem:[#allocation8 + $0x130] sm:$0xff] (!%p779_p10)  ;;  %v502_v62 = vld [vmem:[#allocation8 + $0xc0] sm:$0xff] (!%p779_p10)  ;;  %v291_v48 = vlaneseq (!%p779_p10) }
  0x7b   : > { %895 = vmatpush3.bf16.msra.mxu1 (!%p779_p10), %v894_v40  ;;  %865 = vmatprep.subr.bf16.mxu0 (!%p779_p10), %v864_v44  ;;  %v517_v61 = vld [vmem:[#allocation8 + $0x138] sm:$0xff] (!%p779_p10)  ;;  %v503_v63 = vld [vmem:[#allocation8 + $0xc8] sm:$0xff] (!%p779_p10)  ;;  %v534_v0 = vld [vmem:[#allocation8 + $0x1c0] sm:$0xff] (!%p779_p10)  ;;  %v870_v2 = vpack.c.bf16 (!%p779_p10), %v485_v59, %v484_v56 }
  0x7c   : > { %897 = vmatprep.subr.bf16.mxu1 (!%p779_p10), %v896_v45  ;;  %v535_v1 = vld [vmem:[#allocation8 + $0x1c8] sm:$0xff] (!%p779_p10)  ;;  %v902_v3 = vpack.c.bf16 (!%p779_p10), %v517_v61, %v516_v60  ;;  %v486_v4 = vld [vmem:[#allocation8 + $0x40] sm:$0xff] (!%p779_p10)  ;;  %v872_v6 = vpack.c.bf16 (!%p779_p10), %v503_v63, %v502_v62  ;;  %v488_v16 = vld [vmem:[#allocation8 + $0x50] sm:$0xff] (!%p779_p10)  ;;  %v292_v49 = vshrl.u32 (!%p779_p10), %v291_v48, 7 }
  0x7d   : > { %v487_v5 = vld [vmem:[#allocation8 + $0x48] sm:$0xff] (!%p779_p10)  ;;  %v904_v7 = vpack.c.bf16 (!%p779_p10), %v535_v1, %v534_v0  ;;  %v518_v8 = vld [vmem:[#allocation8 + $0x140] sm:$0xff] (!%p779_p10)  ;;  %v520_v20 = vld [vmem:[#allocation8 + $0x150] sm:$0xff] (!%p779_p10) }
  0x7e   : > { %867 = vmatpush3.bf16.msra.mxu0 (!%p779_p10), %v866_v52  ;;  %v519_v9 = vld [vmem:[#allocation8 + $0x148] sm:$0xff] (!%p779_p10)  ;;  %v874_v14 = vpack.c.bf16 (!%p779_p10), %v487_v5, %v486_v4  ;;  %v521_v21 = vld [vmem:[#allocation8 + $0x158] sm:$0xff] (!%p779_p10)  ;;  %v506_v22 = vld [vmem:[#allocation8 + $0xe0] sm:$0xff] (!%p779_p10)  ;;  %v1344_v50 = vsub.s32 (!%p779_p10), 1, %v292_v49  ;;  %v1346_v51 = vsub.s32 (!%p779_p10), 3, %v292_v49 }
  0x7f   : > { %899 = vmatpush3.bf16.msra.mxu1 (!%p779_p10), %v898_v53  ;;  %869 = vmatprep.subr.bf16.mxu0 (!%p779_p10), %v868_v57  ;;  %v906_v15 = vpack.c.bf16 (!%p779_p10), %v519_v9, %v518_v8  ;;  %v507_v23 = vld [vmem:[#allocation8 + $0xe8] sm:$0xff] (!%p779_p10)  ;;  %v538_v24 = vld [vmem:[#allocation8 + $0x1e0] sm:$0xff] (!%p779_p10)  ;;  %v910_v27 = vpack.c.bf16 (!%p779_p10), %v521_v21, %v520_v20  ;;  %v508_v34 = vld [vmem:[#allocation8 + $0xf0] sm:$0xff] (!%p779_p10)  ;;  %v1353_v57 = vsub.s32 (!%p779_p10), 0, %v292_v49 }
  0x80   : > { %901 = vmatprep.subr.bf16.mxu1 (!%p779_p10), %v900_v58  ;;  %v539_v25 = vld [vmem:[#allocation8 + $0x1e8] sm:$0xff] (!%p779_p10)  ;;  %v490_v28 = vld [vmem:[#allocation8 + $0x60] sm:$0xff] (!%p779_p10)  ;;  %v880_v30 = vpack.c.bf16 (!%p779_p10), %v507_v23, %v506_v22  ;;  %v509_v35 = vld [vmem:[#allocation8 + $0xf8] sm:$0xff] (!%p779_p10)  ;;  %v1355_v58 = vsub.s32 (!%p779_p10), 2, %v292_v49 }
  0x81   : > { %v491_v29 = vld [vmem:[#allocation8 + $0x68] sm:$0xff] (!%p779_p10)  ;;  %v912_v31 = vpack.c.bf16 (!%p779_p10), %v539_v25, %v538_v24  ;;  %v522_v32 = vld [vmem:[#allocation8 + $0x160] sm:$0xff] (!%p779_p10)  ;;  %v540_v36 = vld [vmem:[#allocation8 + $0x1f0] sm:$0xff] (!%p779_p10)  ;;  %v884_v41 = vpack.c.bf16 (!%p779_p10), %v509_v35, %v508_v34 }
  0x82   : > { %871 = vmatpush3.bf16.msra.mxu0 (!%p779_p10), %v870_v2  ;;  %v523_v33 = vld [vmem:[#allocation8 + $0x168] sm:$0xff] (!%p779_p10)  ;;  %v541_v37 = vld [vmem:[#allocation8 + $0x1f8] sm:$0xff] (!%p779_p10)  ;;  %v882_v38 = vpack.c.bf16 (!%p779_p10), %v491_v29, %v490_v28  ;;  %v492_v40 = vld [vmem:[#allocation8 + $0x70] sm:$0xff] (!%p779_p10) }
  0x83   : > { %903 = vmatpush3.bf16.msra.mxu1 (!%p779_p10), %v902_v3  ;;  %873 = vmatprep.subr.bf16.mxu0 (!%p779_p10), %v872_v6  ;;  %v914_v39 = vpack.c.bf16 (!%p779_p10), %v523_v33, %v522_v32  ;;  %v916_v42 = vpack.c.bf16 (!%p779_p10), %v541_v37, %v540_v36  ;;  %v493_v43 = vld [vmem:[#allocation8 + $0x78] sm:$0xff] (!%p779_p10)  ;;  %v524_v44 = vld [vmem:[#allocation8 + $0x170] sm:$0xff] (!%p779_p10)  ;;  %v1351_v56 = vld [vmem:[%s1422_s2] sm:$0xf] (!%p779_p10) }
  0x84   : > { %905 = vmatprep.subr.bf16.mxu1 (!%p779_p10), %v904_v7  ;;  %v525_v45 = vld [vmem:[#allocation8 + $0x178] sm:$0xff] (!%p779_p10)  ;;  %v886_v46 = vpack.c.bf16 (!%p779_p10), %v493_v43, %v492_v40  ;;  %v457_v63 = vrot.slane (!%p779_p10), %v1351_v56, %v1344_v50  ;;  %v465_v4 = vrot.slane (!%p779_p10), %v1351_v56, %v1346_v51 }
  0x85   : > { %v918_v47 = vpack.c.bf16 (!%p779_p10), %v525_v45, %v524_v44  ;;  %v284_v52 = vld [vmem:[#allocation6] ss:$4 sm:$0xf] (!%p779_p10)  ;;  %v320_v53 = vld [vmem:[#allocation6 + $0x1] ss:$4 sm:$0xf] (!%p779_p10) }
  0x86   : > { %875 = vmatpush3.bf16.msra.mxu0 (!%p779_p10), %v874_v14  ;;  %v363_v54 = vld [vmem:[#allocation6 + $0x2] ss:$4 sm:$0xf] (!%p779_p10)  ;;  %v406_v55 = vld [vmem:[#allocation6 + $0x3] ss:$4 sm:$0xf] (!%p779_p10)  ;;  %v298_v59 = vrot.slane (!%p779_p10), %v284_v52, %v1344_v50  ;;  %v329_v60 = vrot.slane (!%p779_p10), %v320_v53, %v1344_v50  ;;  %v306_v0 = vrot.slane (!%p779_p10), %v284_v52, %v1346_v51  ;;  %v337_v1 = vrot.slane (!%p779_p10), %v320_v53, %v1346_v51 }
  0x87   : > { %907 = vmatpush3.bf16.msra.mxu1 (!%p779_p10), %v906_v15  ;;  %v372_v61 = vrot.slane (!%p779_p10), %v363_v54, %v1344_v50  ;;  %v415_v62 = vrot.slane (!%p779_p10), %v406_v55, %v1344_v50  ;;  %v380_v2 = vrot.slane (!%p779_p10), %v363_v54, %v1346_v51  ;;  %v423_v3 = vrot.slane (!%p779_p10), %v406_v55, %v1346_v51 }
  0x88   : > { %v294_v5 = vrot.slane (!%p779_p10), %v284_v52, %v1353_v57  ;;  %v325_v6 = vrot.slane (!%p779_p10), %v320_v53, %v1353_v57  ;;  %v368_v8 = vrot.slane (!%p779_p10), %v363_v54, %v1353_v57  ;;  %v411_v9 = vrot.slane (!%p779_p10), %v406_v55, %v1353_v57 }
  0x89   : > { %v376_v15 = vrot.slane (!%p779_p10), %v363_v54, %v1355_v58 }
 0x102   : > { %281 = sbr.rel (%p779_p10) target bundleno = 639 (0x27f), region = 60 }
 0x105   : > { %v274_v11 = vpop.xlane.xlu0 %273 }
 0x106   : > { %v275_v12 = vadd.f32 %v274_v11, %v269_v10  ;;  %v504_v10 = vld [vmem:[#allocation8 + $0xd0] sm:$0xff] (!%p779_p10)  ;;  %v505_v11 = vld [vmem:[#allocation8 + $0xd8] sm:$0xff] (!%p779_p10) }
 0x107   : > { %v876_v18 = vpack.c.bf16 (!%p779_p10), %v505_v11, %v504_v10  ;;  %v302_v10 = vrot.slane (!%p779_p10), %v284_v52, %v1355_v58  ;;  %v333_v11 = vrot.slane (!%p779_p10), %v320_v53, %v1355_v58  ;;  %v461_v52 = vrot.slane (!%p779_p10), %v1351_v56, %v1355_v58 }
 0x108   : > { %277 = vst.msk [vmem:[#allocation2] sm:$0xff] %vm276_vm1, %v275_v12  ;;  %v536_v12 = vld [vmem:[#allocation8 + $0x1d0] sm:$0xff] (!%p779_p10) }
 0x109   : > { %877 = vmatprep.subr.bf16.mxu0 %v876_v18 }
 0x10f   : > { %v282_v13 = vld [vmem:[#allocation2] sm:$0xff] }
 0x110   : > { %v283_v17 = vmul.f32 0.00048828125, %v282_v13  ;;  %v537_v13 = vld [vmem:[#allocation8 + $0x1d8] sm:$0xff] }
 0x111   : > { %v908_v19 = vpack.c.bf16 %v537_v13, %v536_v12 }
 0x112   : > { %287 = vperm.xlu0 %991, %v283_v17   ;;  %v489_v17 = vld [vmem:[#allocation8 + $0x58] sm:$0xff] }
 0x113   : > { %v878_v26 = vpack.c.bf16 %v489_v17, %v488_v16  ;;  %909 = vmatprep.subr.bf16.mxu1 %v908_v19  ;;  %v419_v19 = vrot.slane %v406_v55, %v1355_v58 }
 0x114   : > { %911 = vmatpush3.bf16.msra.mxu1 %v910_v27 }
 0x115   : > { %879 = vmatpush3.bf16.msra.mxu0 %v878_v26  ;;  %913 = vmatprep.subr.bf16.mxu1 %v912_v31 }
 0x116   : > { %881 = vmatprep.subr.bf16.mxu0 %v880_v30 }
 0x118   : > { %915 = vmatpush3.bf16.msra.mxu1 %v914_v39 }
 0x119   : > { %883 = vmatpush3.bf16.msra.mxu0 %v882_v38  ;;  %917 = vmatprep.subr.bf16.mxu1 %v916_v42 }
 0x11a   : > { %885 = vmatprep.subr.bf16.mxu0 %v884_v41 }
 0x11c   : > { %919 = vmatpush3.bf16.msra.mxu1 %v918_v47 }
 0x11d   : > { %887 = vmatpush3.bf16.msra.mxu0 %v886_v46  ;;  %v453_v46 = vrot.slane %v1351_v56, %v1353_v57  ;;  %v780_v56 = vld [vmem:[%s1424_s4] ss:$0 sm:$0xff] }
 0x191   : > { %v288_v7 = vpop.permute.xlu0 %287 }
 0x192   : > { %v343_v12 = vmul.f32 %v329_v60, %v288_v7  ;;  %v386_v13 = vmul.f32 %v372_v61, %v288_v7  ;;  %v429_v14 = vmul.f32 %v415_v62, %v288_v7  ;;  %v312_v16 = vmul.f32 %v298_v59, %v288_v7 }
 0x193   : > { %v345_v17 = vmul.f32 %v337_v1, %v288_v7  ;;  %v388_v18 = vmul.f32 %v380_v2, %v288_v7  ;;  %v314_v22 = vmul.f32 %v306_v0, %v288_v7  ;;  %v431_v23 = vmul.f32 %v423_v3, %v288_v7 }
 0x194   : > { %v351_v20 = vrot.slane %v343_v12, 2  ;;  %v394_v21 = vrot.slane %v386_v13, 4  ;;  %v437_v24 = vrot.slane %v429_v14, 6  ;;  %v311_v26 = vmul.f32 %v294_v5, %v288_v7 }
 0x195   : > { %v353_v25 = vrot.slane %v345_v17, 2  ;;  %v342_v27 = vmul.f32 %v325_v6, %v288_v7  ;;  %v396_v29 = vrot.slane %v388_v18, 4  ;;  %v385_v30 = vmul.f32 %v368_v8, %v288_v7 }
 0x196   : > { %v359_v28 = vadd.f32 %v351_v20, %v312_v16  ;;  %v428_v31 = vmul.f32 %v411_v9, %v288_v7  ;;  %v344_v34 = vmul.f32 %v333_v11, %v288_v7  ;;  %v387_v35 = vmul.f32 %v376_v15, %v288_v7 }
 0x197   : > { %v361_v32 = vadd.f32 %v353_v25, %v314_v22  ;;  %v350_v33 = vrot.slane %v342_v27, 2  ;;  %v439_v37 = vrot.slane %v431_v23, 6  ;;  %v393_v38 = vrot.slane %v385_v30, 4 }
 0x198   : > { %v402_v36 = vadd.f32 %v394_v21, %v359_v28  ;;  %v313_v39 = vmul.f32 %v302_v10, %v288_v7  ;;  %v352_v42 = vrot.slane %v344_v34, 2  ;;  %v430_v43 = vmul.f32 %v419_v19, %v288_v7 }
 0x199   : > { %v404_v40 = vadd.f32 %v396_v29, %v361_v32  ;;  %v358_v41 = vadd.f32 %v350_v33, %v311_v26  ;;  %v436_v45 = vrot.slane %v428_v31, 6  ;;  %v395_v50 = vrot.slane %v387_v35, 4 }
 0x19a   : > { %v445_v44 = vadd.f32 %v437_v24, %v402_v36  ;;  %v360_v49 = vadd.f32 %v352_v42, %v313_v39  ;;  %v438_v59 = vrot.slane %v430_v43, 6 }
 0x19b   : > { %v447_v47 = vadd.f32 %v439_v37, %v404_v40  ;;  %v401_v48 = vadd.f32 %v393_v38, %v358_v41 }
 0x19c   : > { %v471_v51 = vadd.f32 %v457_v63, %v445_v44  ;;  %v403_v55 = vadd.f32 %v395_v50, %v360_v49 }
 0x19d   : > { %v473_v53 = vadd.f32 %v465_v4, %v447_v47  ;;  %v444_v54 = vadd.f32 %v436_v45, %v401_v48 }
 0x19e   : > { %v475_v60 = vmax.f32 %v471_v51, 0.0  ;;  %v446_v0 = vadd.f32 %v438_v59, %v403_v55 }
 0x19f   : > { %v477_v61 = vmax.f32 %v473_v53, 0.0  ;;  %v470_v62 = vadd.f32 %v453_v46, %v444_v54 }
 0x1a0   : > { %613 = vmatprep.mubr.f32.mxu0 %v475_v60  ;;  %v472_v57 = vadd.f32 %v461_v52, %v446_v0 }
 0x1a1   : > { %683 = vmatprep.mubr.f32.mxu1 %v477_v61  ;;  %v474_v1 = vmax.f32 %v470_v62, 0.0 }
 0x1a2   : > { %v476_v2 = vmax.f32 %v472_v57, 0.0 }
 0x1a3   : > { %614 = vmatmul.mubr.f32.vlgmr.msra.gmra.mrb[0].mxu0 %v474_v1 }
 0x1a4   : > { %684 = vmatmul.mubr.f32.vlgmr.msra.gmra.mrb[0].mxu1 %v476_v2 }
 0x276   : > { %v818_v3 = vpop.f32.mrb[0].mxu0 }
 0x277   : > { %v819_v58 = vpop.f32.mrb[1].mxu0  ;;  %v853_v63 = vpop.f32.mrb[0].mxu1 }
 0x278   : > { %v820_v4 = vadd.f32 %v819_v58, %v818_v3  ;;  %v854_v5 = vpop.f32.mrb[1].mxu1 }
 0x279   : > { %v855_v7 = vadd.f32 %v854_v5, %v853_v63 }
 0x27a   : > { %v616_v6 = vadd.f32 %v820_v4, %v780_v56 }
 0x27c   : > { %v686_v8 = vadd.f32 %v855_v7, %v616_v6 }
 0x27e   : > { %689 = vst [vmem:[#allocation9] sm:$0x3] %v686_v8 }
 0x27f PF: > { %p950_p9 = scmp.eq.s32.totalorder %s1205_s22, 3  ;;  %s1155_s27 = smov [#allocation9]  }
 0x280   : > { %s697_s21 = sshll.u32 %s1155_s27, 4  ;;  %s698_s21 = int_to_ptr.vmem [resolvable:$true] %s697_s21 }
 0x281   : > { %s1078_s30 = scalar_lea.vmem %s698_s21, 32  ;;  %p1085_p6 = scmp.lt.s32.totalorder %s698_s21, %s698_s21 }
 0x282   : > { %p1079_p1 = scmp.ne.s32.totalorder %s698_s21, %s1078_s30  ;;  %p1086_p12 = scmp.lt.s32.totalorder %s1078_s30, %s1078_s30 }
 0x284   : > { %p1080_p4 = pnand %p1079_p1, %p950_p9  ;;  %p1087_p0 = por %p1086_p12, %p1085_p6 }
 0x286   : > { %p1081_p5 = pneg %p1080_p4 }
 0x288   : > { %p1088_p2 = pnand %p1087_p0, %p1081_p5 }
 0x28a   : > { %1091 = shalt.err (!%p1088_p2)
}
 0x28b   : > { %s1092_s7 = scalar_lea.hbm %s1425_s5, 32 }
 0x28c   : > { %p1093_p13 = scmp.ne.s32.totalorder %s1425_s5, %s1092_s7  ;;  %p1098_p7 = scmp.lt.u32.totalorder %s1092_s7, %s1425_s5 }
 0x28e   : > { %p1094_p11 = pnand %p1093_p13, %p950_p9 }
 0x290   : > { %p1095_p3 = pneg %p1094_p11 }
 0x292   : > { %p1100_p8 = pnand %p1098_p7, %p1095_p3 }
 0x294   : > { %1103 = shalt.err (!%p1100_p8)
}
 0x295   : > { %931 = dma.vmem_to_hbm [thread:$0]  (%p950_p9), %s698_s21, 32, %s1425_s5, [#allocation5]  }
 0x296   : > { %1129 = dma.done.wait (%p950_p9), [#allocation5], 32  }
 0x297   : > { %1131 = vsyncadd (%p950_p9), [#allocation5], 4294967264 }
 0x298 PF: > { %p17_p10 = scmp.ge.s32.totalorder %s1280_s10, 6   ;;  %s1438_s18 = smov %s1138_s19 }
 0x299   : > { %s1439_s19 = smov %s1142_s20  ;;  %s1440_s20 = smov %s1291_s14 }
 0x29a   : > { %s1441_s21 = smov %s1280_s10  ;;  %19 = sbr.rel (!%p17_p10) target bundleno = 5 (0x5), region = 96 }
 0x2a1   :  { %710 = vsyncpa [#allocation4], 1 }
 0x2a2   :  { %712 = vsyncpa [#allocation4 + $0x1], 1 }
 0x2a3   :  { %713 = vsyncpa [#allocation7], 1 }
 0x2a4   :  { %714 = vsyncpa [#allocation5], 1 }
 0x2a5   :  { %716 = vsyncpa [#allocation5 + $0x1], 1 }

</bundles_post_ra>
